<compile_context>
chip_gen: v5e
topology: v5e:2x2
jax: 0.10.0
libtpu: 0.0.40
codegen_flags: <defaults>
</compile_context>

<pallas_src>
import functools
import math

import jax
import jax.numpy as jnp
from jax import lax
from jax.experimental import pallas as pl
from jax.experimental.pallas import tpu as pltpu


_DROP_RES = 1 << 16                     # 16-bit resolution for the dropout threshold
_GOLDEN = 0x9E3779B1 - (1 << 32)        # constants as signed int32 bit patterns
_H1 = 0x7FEB352D                        # lowbias32 mixer
_H2 = 0x846CA68B - (1 << 32)


def _round_up(n, m):
    return ((n + m - 1) // m) * m


def _keep_mask(idx_i32, seed_i32, drop_threshold):
    """Stateless keep-mask: P(keep) = 1 - drop_threshold / 2^16.

    Pure int32 ops (wrapping mul, xor, logical shifts) -> identical results in the
    Pallas kernel, in interpret mode, and in the host-side reference.
    """
    u = idx_i32 ^ (seed_i32 * jnp.int32(_GOLDEN))
    u = u ^ lax.shift_right_logical(u, 16)
    u = u * jnp.int32(_H1)
    u = u ^ lax.shift_right_logical(u, 15)
    u = u * jnp.int32(_H2)
    u = u ^ lax.shift_right_logical(u, 16)
    low = jnp.bitwise_and(u, jnp.int32(_DROP_RES - 1))      # uniform in [0, 2^16)
    return low >= jnp.int32(drop_threshold)


# ----------------------------- Pallas kernel ----------------------------------

def _posenc_kernel(seed_ref, x_ref, pe_ref, o_ref, *, batch, drop_threshold, scale):
    # x/o block: (ts, B, D) or (ts, B*D); pe block: (ts, D) from the full table.
    x = x_ref[...]
    pe_blk = pe_ref[...]
    if x.ndim == 3:
        y = x + pe_blk[:, None, :]                 # broadcast over batch (sublane) axis
    else:
        y = x + jnp.tile(pe_blk, (1, batch))       # [pe | pe | ... | pe] along lanes

    if drop_threshold is None:                     # eval / p == 0: dropout is identity
        o_ref[...] = y
        return

    # Global flat element index (row-major over (S, B, D)) -> tiling-invariant mask.
    rows = x.shape[0]
    base = pl.program_id(0) * rows
    if x.ndim == 3:
        _, bsz, dm = x.shape
        r = lax.broadcasted_iota(jnp.int32, x.shape, 0)
        b = lax.broadcasted_iota(jnp.int32, x.shape, 1)
        d = lax.broadcasted_iota(jnp.int32, x.shape, 2)
        gidx = ((base + r) * bsz + b) * dm + d
    else:
        _, bd = x.shape
        r = lax.broadcasted_iota(jnp.int32, x.shape, 0)
        c = lax.broadcasted_iota(jnp.int32, x.shape, 1)
        gidx = (base + r) * bd + c

    keep = _keep_mask(gidx, seed_ref[0], drop_threshold)
    o_ref[...] = jnp.where(keep, y * scale, jnp.zeros_like(y))


# ------------------------------- wrappers --------------------------------------

def make_positional_encoding(d_model, max_len=5000, dtype=jnp.float32):
    """Sinusoidal table matching the PyTorch buffer, stored 2-D: (max_len, d_model)."""
    position = jnp.arange(max_len, dtype=jnp.float32)[:, None]
    div_term = jnp.exp(
        jnp.arange(0, d_model, 2, dtype=jnp.float32) * (-math.log(10000.0) / d_model)
    )
    pe = jnp.zeros((max_len, d_model), jnp.float32)
    pe = pe.at[:, 0::2].set(jnp.sin(position * div_term))
    pe = pe.at[:, 1::2].set(jnp.cos(position * div_term))
    return pe.astype(dtype)                        # build in the model dtype up front


def _num_tensorcores():
    try:
        dev = jax.devices()[0]
        for attr in ("num_cores", "core_count"):
            v = getattr(dev, attr, None)
            if isinstance(v, int) and v > 0:
                return v
    except Exception:
        pass
    return 1


def _choose_tile_rows(S, B, D, itemsize, vmem_budget_bytes, max_rows):
    # Resident per seq-row, double-buffered by the pipeline: x + out + pe blocks.
    row_bytes = (2 * B * D + D) * itemsize
    ts = vmem_budget_bytes // max(2 * row_bytes, 1)
    ts = min(int(ts), max_rows, _round_up(S, 8))
    ts = max(8, (ts // 8) * 8)                     # sublane-aligned -> (8,128) rule OK
    # On multi-TensorCore parts keep >= num_cores grid steps so the "parallel" seq
    # axis can shard across cores; 1-TC chips keep a single step for short seqs.
    cores = _num_tensorcores()
    if cores > 1 and S > 8:
        ts = min(ts, max(8, _round_up(pl.cdiv(S, cores), 8)))
    return ts


def positional_encoding_forward(x, pe, *, dropout_p=0.1, training=False, seed=0,
                                vmem_budget_bytes=16 << 20, max_block_rows=1024):
    """x: (seq, batch, d_model); pe: (max_len, d_model). Returns dropout(x + pe[:seq])."""
    S, B, D = x.shape
    if pe.ndim == 3:                               # accept the torch (max_len,1,D) layout
        pe = pe[:, 0, :]
    assert pe.shape[0] >= S and pe.shape[1] == D, "pe buffer too small / wrong d_model"
    if pe.dtype != x.dtype:                        # normally built in the model dtype
        pe = pe.astype(x.dtype)

    itemsize = jnp.dtype(x.dtype).itemsize
    ts = _choose_tile_rows(S, B, D, itemsize, vmem_budget_bytes, max_block_rows)
    grid = pl.cdiv(S, ts)                          # ragged last block handled by Pallas

    # Lane-dense layout choice.
    flatten = (D % 128 != 0) or (B % 8 != 0)
    if flatten:
        x_in = x.reshape(S, B * D)                 # free for contiguous row-major
        x_spec = pl.BlockSpec((ts, B * D), lambda i, s: (i, 0))
    else:
        x_in = x
        x_spec = pl.BlockSpec((ts, B, D), lambda i, s: (i, 0, 0))
    pe_spec = pl.BlockSpec((ts, D), lambda i, s: (i, 0))   # full table, block-indexed

    use_dropout = bool(training) and float(dropout_p) > 0.0
    drop_threshold = int(round(float(dropout_p) * _DROP_RES)) if use_dropout else None
    scale = float(1.0 / (1.0 - float(dropout_p))) if use_dropout else 1.0

    cost = pl.CostEstimate(
        flops=S * B * D * (4 if use_dropout else 1),
        transcendentals=0,
        bytes_accessed=(2 * S * B * D + S * D) * itemsize,
    )
    cparams = pltpu.CompilerParams(
        dimension_semantics=("parallel",),         # mask is order-independent
        vmem_limit_bytes=int(min(max(2 * vmem_budget_bytes, 32 << 20), 48 << 20)),
    )

    kernel = functools.partial(_posenc_kernel, batch=B,
                               drop_threshold=drop_threshold, scale=scale)
    out = pl.pallas_call(
        kernel,
        out_shape=jax.ShapeDtypeStruct(x_in.shape, x.dtype),
        grid_spec=pltpu.PrefetchScalarGridSpec(
            num_scalar_prefetch=1,                 # dropout seed lives in SMEM
            grid=(grid,),
            in_specs=[x_spec, pe_spec],
            out_specs=x_spec,
        ),
        compiler_params=cparams,
        cost_estimate=cost,
    )(jnp.asarray([seed], dtype=jnp.int32), x_in, pe)

    return out.reshape(S, B, D)


def positional_encoding_reference(x, pe):
    """Pure-JAX reference for the eval-mode forward (dropout = identity)."""
    if pe.ndim == 3:
        pe = pe[:, 0, :]
    return x + pe[: x.shape[0]][:, None, :].astype(x.dtype)


# --------------------------------- main -----------------------------------------

if __name__ == "__main__":
    SEQ, BATCH, D_MODEL, MAX_LEN = 8, 2, 32, 64
    DROPOUT_P = 0.1
    SEED = 42

    key = jax.random.PRNGKey(0)
    x = jax.random.normal(key, (SEQ, BATCH, D_MODEL), jnp.float32)
    pe = make_positional_encoding(D_MODEL, MAX_LEN)

    # ---- eval mode (dropout inactive): must match the reference exactly ----
    out_eval = jax.block_until_ready(
        positional_encoding_forward(x, pe, dropout_p=DROPOUT_P, training=False))
    ref = positional_encoding_reference(x, pe)
    assert out_eval.shape == (SEQ, BATCH, D_MODEL)
    assert jnp.allclose(out_eval, ref, atol=1e-6, rtol=1e-6), "eval-mode mismatch"

    # ---- training mode: fused add + inverted dropout ----
    out_train = jax.block_until_ready(
        positional_encoding_forward(x, pe, dropout_p=DROPOUT_P, training=True, seed=SEED))
    assert out_train.shape == (SEQ, BATCH, D_MODEL)

    # Bit-exact reference: the keep-mask is a pure function of (seed, flat element
    # index) and independent of the kernel's tiling/layout.
    drop_threshold = int(round(DROPOUT_P * _DROP_RES))
    scale = float(1.0 / (1.0 - DROPOUT_P))
    idx = jnp.arange(SEQ * BATCH * D_MODEL, dtype=jnp.int32).reshape(SEQ, BATCH, D_MODEL)
    keep_ref = _keep_mask(idx, jnp.int32(SEED), drop_threshold)
    train_ref = jnp.where(keep_ref, ref * scale, 0.0)
    assert jnp.allclose(out_train, train_ref, atol=1e-5, rtol=1e-5), \
        "training-mode output does not match the counter-PRNG reference"

    drop_frac = 1.0 - float(jnp.mean(keep_ref.astype(jnp.float32)))
    assert abs(drop_frac - DROPOUT_P) < 0.08, f"dropout rate off: {drop_frac}"

    print("KERNEL_OK")
</pallas_src>

<mosaic_0001>
module attributes {stable_mosaic.version = 11 : i64} {
  func.func @_posenc_kernel(%arg0: i32, %arg1: memref<1xi32, #tpu.memory_space<smem>>, %arg2: memref<8x64xf32, #tpu.memory_space<vmem>>, %arg3: memref<8x32xf32, #tpu.memory_space<vmem>>, %arg4: memref<8x64xf32, #tpu.memory_space<vmem>>) attributes {dimension_semantics = [#tpu.dimension_semantics<parallel>], iteration_bounds = array<i64: 1>, scalar_prefetch = 1 : i64, scratch_operands = 0 : i64, tpu.core_type = #tpu.core_type<tc>, window_params = [{transform_indices = @transform_0, window_bounds = array<i64: 8, 64>}, {transform_indices = @transform_1, window_bounds = array<i64: 8, 32>}, {transform_indices = @transform_2, window_bounds = array<i64: 8, 64>}]} {
    %c0 = arith.constant 0 : index
    %c0_0 = arith.constant 0 : index
    %0 = vector.load %arg2[%c0, %c0_0] : memref<8x64xf32, #tpu.memory_space<vmem>>, vector<8x64xf32>
    %c0_1 = arith.constant 0 : index
    %c0_2 = arith.constant 0 : index
    %1 = vector.load %arg3[%c0_1, %c0_2] : memref<8x32xf32, #tpu.memory_space<vmem>>, vector<8x32xf32>
    %2 = tpu.concatenate %1, %1 in 1 : vector<8x32xf32>, vector<8x32xf32> -> vector<8x64xf32>
    %3 = arith.addf %0, %2 : vector<8x64xf32>
    %c0_3 = arith.constant 0 : index
    %c0_4 = arith.constant 0 : index
    %4 = vector.load %arg4[%c0_3, %c0_4] : memref<8x64xf32, #tpu.memory_space<vmem>>, vector<8x64xf32>
    tpu.vector_store %arg4[%c0_3, %c0_4], %3 {strides = array<i32>} : memref<8x64xf32, #tpu.memory_space<vmem>>, vector<8x64xf32>,
    return
  }
  func.func @transform_0(%arg0: i32, %arg1: memref<1xi32, #tpu.memory_space<smem>>) -> (i32, i32) {
    %c0_i32 = arith.constant 0 : i32
    %c0_i32_0 = arith.constant 0 : i32
    return %arg0, %c0_i32 : i32, i32
  }
  func.func @transform_1(%arg0: i32, %arg1: memref<1xi32, #tpu.memory_space<smem>>) -> (i32, i32) {
    %c0_i32 = arith.constant 0 : i32
    %c0_i32_0 = arith.constant 0 : i32
    return %arg0, %c0_i32 : i32, i32
  }
  func.func @transform_2(%arg0: i32, %arg1: memref<1xi32, #tpu.memory_space<smem>>) -> (i32, i32) {
    %c0_i32 = arith.constant 0 : i32
    %c0_i32_0 = arith.constant 0 : i32
    return %arg0, %c0_i32 : i32, i32
  }
}

</mosaic_0001>

<bundles_post_ra>
// kernel: tpu_custom_call.1
= control target key start
LH: loop header
LB: loop body
LE: loop exit
PB: predicated region body
PF: predicated region fallthrough
CT: control target
= control target key end

     0   :  { %s100_s0 = inlined_call_operand.<no memory space> [shape: s32[1], index: 0, kind: input, shape index: {}]   ;;  %s101_s1 = inlined_call_operand.vmem [shape: f32[8,64], index: 1, kind: input, shape index: {}]   ;;  %s102_s2 = inlined_call_operand.vmem [shape: f32[64,32], index: 2, kind: input, shape index: {}]   ;;  %s103_s3 = inlined_call_operand.hbm [shape: f32[8,64], index: 3, kind: output, shape index: {}]  }
   0x1   :  { %v15_v0 = vld [vmem:[%s102_s2] sm:$0xff] }
   0x2   :  { %9 = vsyncpa [#allocation5], 0  ;;  %s69_s14 = smov 32   ;;  %vm20_vm0 = vcmask 261120   ;;  %v14_v1 = vld [vmem:[%s101_s1] sm:$0xff]  ;;  %s70_s0 = smov [#allocation4]  }
   0x3   :  { %17 = vrot.lane.b32.xlu0 %v15_v0, %s69_s14  ;;  %s30_s17 = sshll.u32 %s70_s0, 4  ;;  %s32_s20 = sshll.u32 %s103_s3, 4  ;;  %vm23_vm1 = vcmask 523264   ;;  %s31_s17 = int_to_ptr.vmem [resolvable:$true] %s30_s17  ;;  %s33_s20 = int_to_ptr.hbm [resolvable:$true] %s32_s20 }
  0x75   :  { %v18_v2 = vpop.permute.xlu0 %17 }
  0x76   :  { %v21_v3 = vsel %vm20_vm0, %v15_v0, %v18_v2 }
  0x77   :  { %v22_v4 = vadd.f32 %v21_v3, %v14_v1 }
  0x79   :  { %24 = vst.msk [vmem:[#allocation4] sm:$0xff] %vm23_vm1, %v22_v4 }
  0x7a   :  { %35 = dma.vmem_to_hbm [thread:$0]  %s31_s17, 128, %s33_s20, [#allocation5]  }
  0x7b   :  { %67 = dma.done.wait [#allocation5], 128  }
  0x7c   :  { %68 = vsyncadd [#allocation5], 4294967168 }
  0x7d   :  { %40 = vsyncpa [#allocation5], 1 }

</bundles_post_ra>
